<compile_context>
chip_gen: v5e
topology: v5e:2x2
jax: 0.10.0
libtpu: 0.0.40
codegen_flags: <defaults>
</compile_context>

<pallas_src>
import jax
import jax.numpy as jnp
from jax.experimental import pallas as pl
from jax.experimental.pallas import tpu as pltpu


def _pos_emb_add_kernel(x_ref, pe_ref, o_ref):
    # x_ref: (TB, TF), pe_ref: (1, TF) -> broadcast add over rows.
    o_ref[...] = (x_ref[...] + pe_ref[...]).astype(o_ref.dtype)


def _round_down(value: int, multiple: int) -> int:
    return max(multiple, (value // multiple) * multiple)


def _choose_blocks(num_rows: int, num_cols: int, itemsize: int,
                   target_tile_bytes: int):
    """Pick (row_block, col_block) for a (num_rows, num_cols) slab.

    Constraints: col_block is the full width or a multiple of 128;
    row_block is the full height or a multiple of 8.
    """
    # Column (lane) block: take the full row if even an 8-row slab fits the
    # budget, otherwise a large multiple of 128.
    if num_cols * itemsize * 8 <= target_tile_bytes:
        col_block = num_cols
    else:
        col_block = _round_down(target_tile_bytes // (8 * itemsize), 128)
        col_block = min(col_block, _round_down(num_cols, 128))

    # Row (sublane) block.
    rows_fitting = max(1, target_tile_bytes // (col_block * itemsize))
    if rows_fitting >= num_rows or num_rows <= 8:
        row_block = num_rows
    else:
        row_block = min(_round_down(rows_fitting, 8), _round_down(num_rows, 8))
    return row_block, col_block


def positional_embedding_forward(x: jax.Array, pos_emb: jax.Array,
                                 *, target_tile_bytes: int = 2 << 20) -> jax.Array:
    """x: (B, N, D); pos_emb: (1, N, D). Returns x + pos_emb (broadcast over B)."""
    B, N, D = x.shape
    assert pos_emb.shape == (1, N, D), (pos_emb.shape, (1, N, D))

    F = N * D
    x2 = x.reshape(B, F)           # lane-dense 2D slab
    pe2 = pos_emb.reshape(1, F)

    itemsize = jnp.dtype(x.dtype).itemsize
    tb, tf = _choose_blocks(B, F, itemsize, target_tile_bytes)

    grid = (pl.cdiv(B, tb), pl.cdiv(F, tf))

    out2 = pl.pallas_call(
        _pos_emb_add_kernel,
        out_shape=jax.ShapeDtypeStruct((B, F), x.dtype),
        grid_spec=pltpu.PrefetchScalarGridSpec(
            num_scalar_prefetch=0,
            grid=grid,
            in_specs=[
                # x: (tb, tf) tile per grid step.
                pl.BlockSpec((tb, tf), lambda i, j: (i, j)),
                # positional embedding: constant row block (shared across all
                # row tiles), only the column block index varies.
                pl.BlockSpec((1, tf), lambda i, j: (0, j)),
            ],
            out_specs=pl.BlockSpec((tb, tf), lambda i, j: (i, j)),
        ),
        compiler_params=pltpu.CompilerParams(
            dimension_semantics=("parallel", "parallel"),
            vmem_limit_bytes=32 * 1024 * 1024,
        ),
    )(x2, pe2)

    return out2.reshape(B, N, D)


if __name__ == "__main__":
    # Module hyperparameters (small, consistent with the forward semantics).
    batch = 2
    num_patches = 8
    embedding_dim = 32

    key = jax.random.PRNGKey(0)
    x = jax.random.normal(key, (batch, num_patches, embedding_dim), dtype=jnp.float32)

    # Deterministic parameter init matching nn.Parameter(torch.ones(1, N, D)).
    pos_emb = jnp.ones((1, num_patches, embedding_dim), dtype=jnp.float32)

    out = positional_embedding_forward(x, pos_emb)
    jax.block_until_ready(out)

    # Correctness check against the trivial JAX reference.
    ref = x + pos_emb
    assert out.shape == (batch, num_patches, embedding_dim)
    assert jnp.allclose(out, ref), "mismatch vs reference"

    print("KERNEL_OK")
</pallas_src>

<mosaic_0001>
module attributes {stable_mosaic.version = 11 : i64} {
  func.func @_pos_emb_add_kernel(%arg0: i32, %arg1: i32, %arg2: memref<2x256xf32, #tpu.memory_space<vmem>>, %arg3: memref<1x256xf32, #tpu.memory_space<vmem>>, %arg4: memref<2x256xf32, #tpu.memory_space<vmem>>) attributes {dimension_semantics = [#tpu.dimension_semantics<parallel>, #tpu.dimension_semantics<parallel>], iteration_bounds = array<i64: 1, 1>, scalar_prefetch = 0 : i64, scratch_operands = 0 : i64, tpu.core_type = #tpu.core_type<tc>, window_params = [{transform_indices = @transform_0, window_bounds = array<i64: 2, 256>}, {transform_indices = @transform_1, window_bounds = array<i64: 1, 256>}, {transform_indices = @transform_2, window_bounds = array<i64: 2, 256>}]} {
    %c0 = arith.constant 0 : index
    %c0_0 = arith.constant 0 : index
    %0 = vector.load %arg2[%c0, %c0_0] : memref<2x256xf32, #tpu.memory_space<vmem>>, vector<2x256xf32>
    %c0_1 = arith.constant 0 : index
    %c0_2 = arith.constant 0 : index
    %1 = vector.load %arg3[%c0_1, %c0_2] : memref<1x256xf32, #tpu.memory_space<vmem>>, vector<1x256xf32>
    %2 = vector.broadcast %1 : vector<1x256xf32> to vector<2x256xf32>
    %3 = arith.addf %0, %2 : vector<2x256xf32>
    %c0_3 = arith.constant 0 : index
    %c0_4 = arith.constant 0 : index
    %4 = vector.load %arg4[%c0_3, %c0_4] : memref<2x256xf32, #tpu.memory_space<vmem>>, vector<2x256xf32>
    tpu.vector_store %arg4[%c0_3, %c0_4], %3 {strides = array<i32>} : memref<2x256xf32, #tpu.memory_space<vmem>>, vector<2x256xf32>,
    return
  }
  func.func @transform_0(%arg0: i32, %arg1: i32) -> (i32, i32) {
    %c0_i32 = arith.constant 0 : i32
    return %arg0, %arg1 : i32, i32
  }
  func.func @transform_1(%arg0: i32, %arg1: i32) -> (i32, i32) {
    %c0_i32 = arith.constant 0 : i32
    %c0_i32_0 = arith.constant 0 : i32
    return %c0_i32, %arg1 : i32, i32
  }
  func.func @transform_2(%arg0: i32, %arg1: i32) -> (i32, i32) {
    %c0_i32 = arith.constant 0 : i32
    return %arg0, %arg1 : i32, i32
  }
}

</mosaic_0001>

<bundles_post_ra>
// kernel: tpu_custom_call.1
= control target key start
LH: loop header
LB: loop body
LE: loop exit
PB: predicated region body
PF: predicated region fallthrough
CT: control target
= control target key end

     0   :  { %7 = vsyncpa [#allocation3], 0  ;;  %s177_s0 = inlined_call_operand.hbm [shape: f32[2,256], index: 0, kind: input, shape index: {}]   ;;  %s178_s1 = inlined_call_operand.hbm [shape: f32[1,256], index: 1, kind: input, shape index: {}]   ;;  %s179_s2 = inlined_call_operand.hbm [shape: f32[2,256], index: 2, kind: output, shape index: {}]  }
   0x1   :  { %8 = vsyncpa [#allocation6], 0 }
   0x2   :  { %9 = vsyncpa [#allocation4], 0  ;;  %s15_s11 = sshll.u32 %s177_s0, 4  ;;  %s150_s12 = smov [#allocation2]   ;;  %s16_s11 = int_to_ptr.hbm [resolvable:$true] %s15_s11 }
   0x3   :  { %s17_s13 = sshll.u32 %s150_s12, 4  ;;  %s26_s16 = sshll.u32 %s178_s1, 4  ;;  %s18_s13 = int_to_ptr.vmem [resolvable:$true] %s17_s13  ;;  %s27_s16 = int_to_ptr.hbm [resolvable:$true] %s26_s16 }
   0x4   :  { %20 = dma.hbm_to_vmem [thread:$0]  %s16_s11, 64, %s18_s13, [#allocation3]  }
   0x5   :  { %s151_s17 = smov [#allocation5]  }
   0x6   :  { %s28_s18 = sshll.u32 %s151_s17, 4  ;;  %s29_s18 = int_to_ptr.vmem [resolvable:$true] %s28_s18 }
   0x7   :  { %31 = dma.hbm_to_vmem [thread:$0]  %s27_s16, 32, %s29_s18, [#allocation6]  }
   0x8   :  { %144 = dma.done.wait [#allocation3], 64  }
   0x9   :  { %145 = vsyncadd [#allocation3], 4294967232 }
   0xa   :  { %146 = dma.done.wait [#allocation6], 32  }
   0xb   :  { %147 = vsyncadd [#allocation6], 4294967264  ;;  %v41_v0 = vld [vmem:[#allocation5] sm:$0x3]  ;;  %vm46_vm0 = vcmask 1041408   ;;  %s152_s0 = smov [#allocation7]  }
   0xc   :  { %v43_v1 = vperm.slane %v41_v0, 0  ;;  %v44_v2 = vperm.slane %v41_v0, 1  ;;  %v40_v3 = vld [vmem:[#allocation2] sm:$0xf]  ;;  %s56_s19 = sshll.u32 %s152_s0, 4  ;;  %s58_s21 = sshll.u32 %s179_s2, 4  ;;  %s57_s19 = int_to_ptr.vmem [resolvable:$true] %s56_s19  ;;  %s59_s21 = int_to_ptr.hbm [resolvable:$true] %s58_s21 }
   0xe   :  { %v45_v4 = vrot.slane %v44_v2, 6 }
  0x10   :  { %v47_v5 = vsel %vm46_vm0, %v43_v1, %v45_v4 }
  0x11   :  { %v49_v6 = vadd.f32 %v47_v5, %v40_v3 }
  0x13   :  { %50 = vst [vmem:[#allocation7] sm:$0xf] %v49_v6 }
  0x14   :  { %61 = dma.vmem_to_hbm [thread:$0]  %s57_s19, 64, %s59_s21, [#allocation4]  }
  0x15   :  { %148 = dma.done.wait [#allocation4], 64  }
  0x16   :  { %149 = vsyncadd [#allocation4], 4294967232 }
  0x17   :  { %66 = vsyncpa [#allocation3], 1 }
  0x18   :  { %67 = vsyncpa [#allocation6], 1 }
  0x19   :  { %68 = vsyncpa [#allocation4], 1 }

</bundles_post_ra>
